<compile_context>
chip_gen: v7x
topology: tpu7x:2x2x1
jax: 0.10.0
libtpu: 0.0.40
codegen_flags: <defaults>
</compile_context>

<pallas_src>
import jax
import jax.numpy as jnp
from jax.experimental import pallas as pl
from jax.experimental.pallas import tpu as pltpu

_THRESH = 0.04045
_GAMMA = 2.4
_INV_12_92 = 1.0 / 12.92   # multiplies stay on the 4-wide VPU mul slot
_INV_1_055 = 1.0 / 1.055


def _srgb2linear_kernel(x_ref, o_ref):
    # x_ref / o_ref: (TH, LANES) VMEM tiles of flattened pixels.
    x = x_ref[...].astype(jnp.float32)
    base = (x + 0.055) * _INV_1_055
    # ((x+0.055)/1.055)**2.4 as exp(2.4*log(.)) -- two EUP transcendentals that
    # hide under the HBM DMA on v5e/v6e.  NaNs produced in the unselected
    # branch for x <= -0.055 are discarded by the where (matches jnp.power).
    gamma_branch = jnp.exp(_GAMMA * jnp.log(base))
    linear_branch = x * _INV_12_92
    o_ref[...] = jnp.where(x > _THRESH, gamma_branch, linear_branch).astype(o_ref.dtype)
    # TODO(synk): on v7x (esp. bf16 inputs) the two EUP ops/element can become
    # the binding unit; a VPU-only minimax polynomial for base**2.4 on
    # base in [~0.09, 1] would restore the HBM roofline there.


_LANE_CANDIDATES = (2048, 1024, 512, 256, 128)
_TARGET_BLOCK_BYTES = 4 * 1024 * 1024   # ~4 MiB/block; in+out double-buffered ~16 MiB VMEM


def _choose_tile_rows(rows: int, lane_width: int, itemsize: int, sub: int) -> int:
    if rows < 2 * sub:
        return rows                       # tiny input: single full-extent block
    target_rows = max(sub, (_TARGET_BLOCK_BYTES // (lane_width * itemsize)) // sub * sub)
    quarter = ((rows + 3) // 4) // sub * sub   # aim for >= 4 grid steps on small inputs
    return max(sub, min(target_rows, quarter))


def srgb_to_linear(x: jax.Array) -> jax.Array:
    """sRGB -> linear RGB conversion. x: any-shaped float array (NCHW images)."""
    orig_shape = x.shape
    dtype = x.dtype
    total = x.size
    itemsize = jnp.dtype(dtype).itemsize
    sub = 8 if itemsize >= 4 else (16 if itemsize == 2 else 32)

    flat = x.reshape(-1)

    lane_width = 0
    for cand in _LANE_CANDIDATES:
        if total % cand == 0:
            lane_width = cand
            break

    padded = False
    if lane_width == 0:
        # Ragged element count (rare for image tensors): pad only the tail up
        # to the next multiple of 128 lanes.
        lane_width = 128
        rows = pl.cdiv(total, lane_width)
        flat = jnp.pad(flat, (0, rows * lane_width - total))
        padded = True
    else:
        rows = total // lane_width

    x2d = flat.reshape(rows, lane_width)          # free bitcast on the common path
    th = _choose_tile_rows(rows, lane_width, itemsize, sub)
    grid = (pl.cdiv(rows, th),)

    out2d = pl.pallas_call(
        _srgb2linear_kernel,
        out_shape=jax.ShapeDtypeStruct((rows, lane_width), dtype),
        grid_spec=pltpu.PrefetchScalarGridSpec(
            num_scalar_prefetch=0,
            grid=grid,
            in_specs=[pl.BlockSpec((th, lane_width), lambda i: (i, 0))],
            out_specs=pl.BlockSpec((th, lane_width), lambda i: (i, 0)),
        ),
        compiler_params=pltpu.CompilerParams(
            dimension_semantics=("parallel",),
            # Raised above v5e's 16 MiB default scoped limit; well under v7x's
            # 64 MiB physical VMEM given ~16 MiB of pipelined buffers.
            vmem_limit_bytes=48 * 1024 * 1024,
        ),
        cost_estimate=pl.CostEstimate(
            flops=5 * total,
            transcendentals=2 * total,
            bytes_accessed=2 * total * itemsize,
        ),
    )(x2d)

    if padded:
        return out2d.reshape(-1)[:total].reshape(orig_shape)
    return out2d.reshape(orig_shape)              # free bitcast; no extra HBM traffic


def _ref_srgb_to_linear(x: jax.Array) -> jax.Array:
    return jnp.where(x > _THRESH, jnp.power((x + 0.055) / 1.055, _GAMMA), x / 12.92)


if __name__ == "__main__":
    key = jax.random.PRNGKey(0)

    # Primary: small NCHW sRGB image batch, values in [0, 1).
    x = jax.random.uniform(key, (2, 3, 16, 16), dtype=jnp.float32)
    out = srgb_to_linear(x)
    jax.block_until_ready(out)
    assert out.shape == x.shape and out.dtype == x.dtype
    assert jnp.allclose(out, _ref_srgb_to_linear(x), atol=1e-5, rtol=1e-5)

    # Multi-block path with a partial last block (75 rows, tile of 16).
    x2 = jax.random.uniform(jax.random.PRNGKey(1), (1, 3, 100, 128), dtype=jnp.float32)
    out2 = srgb_to_linear(x2)
    jax.block_until_ready(out2)
    assert jnp.allclose(out2, _ref_srgb_to_linear(x2), atol=1e-5, rtol=1e-5)

    # Ragged total -> tail-pad fallback path.
    x3 = jax.random.uniform(jax.random.PRNGKey(2), (2, 3, 15, 15), dtype=jnp.float32)
    out3 = srgb_to_linear(x3)
    jax.block_until_ready(out3)
    assert jnp.allclose(out3, _ref_srgb_to_linear(x3), atol=1e-5, rtol=1e-5)

    print("KERNEL_OK")
</pallas_src>

<mosaic_0001>
module attributes {stable_mosaic.version = 11 : i64} {
  func.func @_srgb2linear_kernel(%arg0: i32, %arg1: memref<3x512xf32, #tpu.memory_space<vmem>>, %arg2: memref<3x512xf32, #tpu.memory_space<vmem>>) attributes {dimension_semantics = [#tpu.dimension_semantics<parallel>], iteration_bounds = array<i64: 1>, scalar_prefetch = 0 : i64, scratch_operands = 0 : i64, tpu.core_type = #tpu.core_type<tc>, window_params = [{transform_indices = @transform_0, window_bounds = array<i64: 3, 512>}, {transform_indices = @transform_1, window_bounds = array<i64: 3, 512>}]} {
    %c0 = arith.constant 0 : index
    %c0_0 = arith.constant 0 : index
    %0 = vector.load %arg1[%c0, %c0_0] : memref<3x512xf32, #tpu.memory_space<vmem>>, vector<3x512xf32>
    %cst = arith.constant 5.500000e-02 : f32
    %1 = vector.broadcast %cst : f32 to vector<3x512xf32>
    %2 = arith.addf %0, %1 : vector<3x512xf32>
    %cst_1 = arith.constant 0.947867274 : f32
    %3 = vector.broadcast %cst_1 : f32 to vector<3x512xf32>
    %4 = arith.mulf %2, %3 : vector<3x512xf32>
    %5 = math.log %4 : vector<3x512xf32>
    %cst_2 = arith.constant 2.400000e+00 : f32
    %6 = vector.broadcast %cst_2 : f32 to vector<3x512xf32>
    %7 = arith.mulf %6, %5 : vector<3x512xf32>
    %8 = math.exp %7 : vector<3x512xf32>
    %cst_3 = arith.constant 0.0773993805 : f32
    %9 = vector.broadcast %cst_3 : f32 to vector<3x512xf32>
    %10 = arith.mulf %0, %9 : vector<3x512xf32>
    %cst_4 = arith.constant 4.045000e-02 : f32
    %11 = vector.broadcast %cst_4 : f32 to vector<3x512xf32>
    %12 = arith.cmpf ogt, %0, %11 : vector<3x512xf32>
    %13 = arith.select %12, %8, %10 : vector<3x512xi1>, vector<3x512xf32>
    %c0_5 = arith.constant 0 : index
    %c0_6 = arith.constant 0 : index
    %14 = vector.load %arg2[%c0_5, %c0_6] : memref<3x512xf32, #tpu.memory_space<vmem>>, vector<3x512xf32>
    tpu.vector_store %arg2[%c0_5, %c0_6], %13 {strides = array<i32>} : memref<3x512xf32, #tpu.memory_space<vmem>>, vector<3x512xf32>,
    return
  }
  func.func @transform_0(%arg0: i32) -> (i32, i32) {
    %c0_i32 = arith.constant 0 : i32
    %c0_i32_0 = arith.constant 0 : i32
    return %arg0, %c0_i32 : i32, i32
  }
  func.func @transform_1(%arg0: i32) -> (i32, i32) {
    %c0_i32 = arith.constant 0 : i32
    %c0_i32_0 = arith.constant 0 : i32
    return %arg0, %c0_i32 : i32, i32
  }
}

</mosaic_0001>

<bundles_post_ra>
// kernel: tpu_custom_call.1
= control target key start
LH: loop header
LB: loop body
LE: loop exit
PB: predicated region body
PF: predicated region fallthrough
CT: control target
= control target key end

     0   :  { %6 = vsyncpa [#allocation3], 0  ;;  %s154_s0 = inlined_call_operand.hbm [shape: f32[3,512], index: 0, kind: input, shape index: {}]   ;;  %s155_s1 = inlined_call_operand.hbm [shape: f32[3,512], index: 1, kind: output, shape index: {}]  }
   0x1   :  { %7 = vsyncpa [#allocation4], 0  ;;  %s118_s6 = smov [#allocation2]   ;;  %s70_s10 = scalar_lea.hbm %s154_s0, 256 }
   0x2   :  { %s14_s7 = sshll.u32 %s118_s6, 4  ;;  %p71_p0 = scmp.ne.s32.totalorder %s154_s0, %s70_s10  ;;  %s15_s7 = int_to_ptr.vmem [resolvable:$true] %s14_s7 }
   0x3   :  { %p74_p1 = scmp.lt.u32.totalorder %s70_s10, %s154_s0 }
   0x5   :  { %p76_p2 = pnand %p74_p1, %p71_p0 }
   0x7   :  { %79 = shalt.err (!%p76_p2)
}
   0x8   :  { %s80_s15 = scalar_lea.vmem %s15_s7, 256  ;;  %p85_p4 = scmp.lt.s32.totalorder %s15_s7, %s15_s7 }
   0x9   :  { %p81_p3 = scmp.ne.s32.totalorder %s15_s7, %s80_s15  ;;  %p86_p5 = scmp.lt.s32.totalorder %s80_s15, %s80_s15 }
   0xb   :  { %p87_p6 = por %p86_p5, %p85_p4 }
   0xd   :  { %p88_p7 = pnand %p87_p6, %p81_p3 }
   0xf   :  { %91 = shalt.err (!%p88_p7)
}
  0x10   :  { %17 = dma.hbm_to_vmem [thread:$0]  %s154_s0, 256, %s15_s7, [#allocation3]  }
  0x11   :  { %114 = dma.done.wait [#allocation3], 256  }
  0x12   :  { %115 = vsyncadd [#allocation3], 4294967040  ;;  %v21_v0 = vld [vmem:[#allocation2] sm:$0x77]  ;;  %v22_v1 = vld [vmem:[#allocation2 + $0x8] sm:$0x77] }
  0x13   :  { %v23_v2 = vadd.f32 0.055, %v21_v0  ;;  %v24_v3 = vadd.f32 0.055, %v22_v1  ;;  %v37_v14 = vmul.f32 0.07739938, %v21_v0 }
  0x14   :  { %vm39_vm0 = vcmp.gt.f32.partialorder %v21_v0, 0.04045  ;;  %v38_v15 = vmul.f32 0.07739938, %v22_v1  ;;  %s119_s0 = smov [#allocation5]  }
  0x15   :  { %v25_v4 = vmul.f32 0.9478673, %v23_v2  ;;  %v26_v5 = vmul.f32 0.9478673, %v24_v3  ;;  %s51_s18 = sshll.u32 %s119_s0, 4  ;;  %s52_s18 = int_to_ptr.vmem [resolvable:$true] %s51_s18 }
  0x16   :  { %vm40_vm1 = vcmp.gt.f32.partialorder %v22_v1, 0.04045  ;;  %s92_s19 = scalar_lea.vmem %s52_s18, 256  ;;  %p97_p9 = scmp.lt.s32.totalorder %s52_s18, %s52_s18 }
  0x17   :  { %62 = vlog2.f32 %v25_v4  ;;  %p93_p8 = scmp.ne.s32.totalorder %s52_s18, %s92_s19  ;;  %p98_p10 = scmp.lt.s32.totalorder %s92_s19, %s92_s19 }
  0x18   :  { %64 = vlog2.f32 %v26_v5 }
  0x19   :  { %p99_p11 = por %p98_p10, %p97_p9 }
  0x1b   :  { %p100_p12 = pnand %p99_p11, %p93_p8 }
  0x21   :  { %v63_v6 = vpop.eup %62 }
  0x22   :  { %v65_v7 = vpop.eup %64  ;;  %v28_v8 = vmul.f32 0.6931472, %v63_v6 }
  0x23   :  { %v30_v9 = vmul.f32 0.6931472, %v65_v7 }
  0x24   :  { %v31_v10 = vmul.f32 2.4, %v28_v8 }
  0x25   :  { %v32_v11 = vmul.f32 2.4, %v30_v9 }
  0x26   :  { %v33_v12 = vmul.f32 1.442695, %v31_v10 }
  0x27   :  { %v35_v13 = vmul.f32 1.442695, %v32_v11 }
  0x28   :  { %66 = vpow2.f32 %v33_v12 }
  0x29   :  { %68 = vpow2.f32 %v35_v13 }
  0x32   :  { %v67_v16 = vpop.eup %66 }
  0x33   :  { %v69_v17 = vpop.eup %68  ;;  %v41_v18 = vsel %vm39_vm0, %v67_v16, %v37_v14 }
  0x34   :  { %43 = vst [vmem:[#allocation5] sm:$0x77] %v41_v18  ;;  %v42_v19 = vsel %vm40_vm1, %v69_v17, %v38_v15 }
  0x35   :  { %44 = vst [vmem:[#allocation5 + $0x8] sm:$0x77] %v42_v19 }
  0x36   :  { %103 = shalt.err (!%p100_p12)
}
  0x37   :  { %s104_s22 = scalar_lea.hbm %s155_s1, 256 }
  0x38   :  { %p105_p13 = scmp.ne.s32.totalorder %s155_s1, %s104_s22  ;;  %p108_p0 = scmp.lt.u32.totalorder %s104_s22, %s155_s1 }
  0x3a   :  { %p110_p1 = pnand %p108_p0, %p105_p13 }
  0x3c   :  { %113 = shalt.err (!%p110_p1)
}
  0x3d   :  { %54 = dma.vmem_to_hbm [thread:$0]  %s52_s18, 256, %s155_s1, [#allocation4]  }
  0x3e   :  { %116 = dma.done.wait [#allocation4], 256  }
  0x3f   :  { %117 = vsyncadd [#allocation4], 4294967040 }
  0x40   :  { %58 = vsyncpa [#allocation3], 1 }
  0x41   :  { %59 = vsyncpa [#allocation4], 1 }

</bundles_post_ra>
